<compile_context>
chip_gen: v5e
topology: v5e:2x2
jax: 0.10.0
libtpu: 0.0.40
codegen_flags: <defaults>
</compile_context>

<pallas_src>
import math
import functools

import jax
import jax.numpy as jnp
from jax import lax
from jax.experimental import pallas as pl
from jax.experimental.pallas import tpu as pltpu


def _round_up(x: int, m: int) -> int:
    return (x + m - 1) // m * m


# ---------------------------------------------------------------------------
# Path A1: VMEM-resident table, one-hot MXU matmul gather (small vocab).
# ---------------------------------------------------------------------------
def _embed_onehot_kernel(tok_ref, emb_ref, out_ref, *, scale, vocab_size):
    # tok_ref : VMEM [T, 1] int32 token block
    # emb_ref : VMEM [V_pad, D_pad] whole table (copied in once, single buffer)
    # out_ref : VMEM [T, D_pad] dense output block
    tok = jnp.clip(tok_ref[...], 0, vocab_size - 1)                    # (T, 1)
    t_blk = tok_ref.shape[0]
    v_pad = emb_ref.shape[0]
    iota = lax.broadcasted_iota(jnp.int32, (t_blk, v_pad), 1)
    one_hot = (iota == tok).astype(emb_ref.dtype)                      # (T, V)
    acc = jnp.dot(one_hot, emb_ref[...], preferred_element_type=jnp.float32)
    out_ref[...] = (acc * scale).astype(out_ref.dtype)


# ---------------------------------------------------------------------------
# Path A2: VMEM-resident table, 8-rows-at-a-time scalar gather (large vocab).
# ---------------------------------------------------------------------------
def _embed_vmem_gather_kernel(tok_ref, emb_ref, out_ref, row_buf, *,
                              scale, block_tokens, vocab_size):
    # tok_ref : SMEM [n_pad] int32 (scalar prefetch)
    # emb_ref : VMEM [V_pad, D_pad] whole table
    # out_ref : VMEM [T, D_pad]
    # row_buf : VMEM [8, D_pad] scratch
    i = pl.program_id(0)
    base = i * block_tokens

    def group(g, carry):
        off = pl.multiple_of(g * 8, 8)

        def gather_row(t, c):
            row = jnp.clip(tok_ref[base + off + t], 0, vocab_size - 1)
            row_buf[pl.ds(t, 1), :] = emb_ref[pl.ds(row, 1), :]
            return c

        lax.fori_loop(0, 8, gather_row, 0, unroll=True)
        # One dense sublane/lane-aligned store per 8 rows.
        out_ref[pl.ds(off, 8), :] = (row_buf[...] * scale).astype(out_ref.dtype)
        return carry

    lax.fori_loop(0, block_tokens // 8, group, 0, unroll=False)


# ---------------------------------------------------------------------------
# Path B: HBM-resident table, wave-pipelined row DMAs directly into out_ref.
# ---------------------------------------------------------------------------
def _embed_hbm_kernel(tok_ref, emb_hbm, out_ref, sem, *, scale, block_tokens,
                      vocab_size, wave):
    # tok_ref : SMEM [n_pad] int32 (scalar prefetch)
    # emb_hbm : HBM  [V_pad, D_pad] (memory_space=pl.ANY, no auto-DMA)
    # out_ref : VMEM [T, D_pad] (DMA destination AND output block)
    # sem     : DMA semaphore array (2,) -- one per wave slot
    i = pl.program_id(0)
    base = i * block_tokens
    n_waves = block_tokens // wave

    def issue_wave(w, slot):
        off = w * wave

        def issue(t, c):
            # SMEM token reads happen before any .wait() of this wave slot.
            row = jnp.clip(tok_ref[base + off + t], 0, vocab_size - 1)
            pltpu.make_async_copy(
                emb_hbm.at[pl.ds(row, 1), :],
                out_ref.at[pl.ds(off + t, 1), :],
                sem.at[slot],
            ).start()
            return c

        lax.fori_loop(0, wave, issue, 0, unroll=True)

    # Prime: issue wave 0 on slot 0.
    issue_wave(0, 0)

    def step(w, carry):
        slot = w % 2

        # Overlap: issue wave w+1 before waiting on wave w.
        @pl.when(w + 1 < n_waves)
        def _():
            issue_wave(w + 1, 1 - slot)

        def wait_row(t, c):
            # NOTE: every row copy of a wave has an identical (1, D_pad)
            # descriptor, so a same-sized dummy descriptor on the shared
            # per-slot semaphore is a valid wait for any one of them.
            pltpu.make_async_copy(
                emb_hbm.at[pl.ds(0, 1), :],
                out_ref.at[pl.ds(0, 1), :],
                sem.at[slot],
            ).wait()
            return c

        lax.fori_loop(0, wave, wait_row, 0, unroll=True)

        # Scale wave w in place with one dense, aligned store.
        off = pl.multiple_of(w * wave, wave)
        out_ref[pl.ds(off, wave), :] = (
            out_ref[pl.ds(off, wave), :] * scale).astype(out_ref.dtype)
        return carry

    lax.fori_loop(0, n_waves, step, 0, unroll=False)


def token_embedder(tokens: jax.Array, emb_table: jax.Array, *,
                   block_tokens: int | None = None,
                   path: str | None = None,
                   onehot_vocab_limit: int = 2048) -> jax.Array:
    """Pallas equivalent of TokenEmbedder.forward: emb_table[tokens]*sqrt(D).

    path: None (auto) | "onehot" | "vmem_gather" | "hbm".
    """
    assert path in (None, "onehot", "vmem_gather", "hbm")
    B, S = tokens.shape
    V, D = emb_table.shape
    n = B * S
    scale = float(math.sqrt(D))               # sqrt of the *logical* emb_dim
    out_dtype = emb_table.dtype
    itemsize = jnp.dtype(emb_table.dtype).itemsize

    # Lane-dense feature dim, sublane-aligned vocab dim. Padded rows/cols are
    # never selected / are sliced off (token ids are clamped to the logical V).
    D_pad = _round_up(D, 128)
    V_pad = _round_up(V, 8)
    if (V_pad, D_pad) != (V, D):
        emb_table = jnp.pad(emb_table, ((0, V_pad - V), (0, D_pad - D)))
    row_bytes = D_pad * itemsize

    # Generation-aware VMEM budget (v5e/v6e: 128 MiB, v7x: 64 MiB physical).
    try:
        vmem_cap = int(pltpu.get_tpu_info().vmem_capacity_bytes)
    except Exception:
        vmem_cap = 64 * 1024 * 1024           # conservative (v7x)
    vmem_limit = min(int(vmem_cap * 0.8), 110 * 1024 * 1024)

    # Tokens per grid step: big enough that each (T, D_pad) output block is
    # ~1 MiB (amortizes ~0.35us per-step overhead), multiple of 8 so the block
    # is sublane/lane dense.
    if block_tokens is None:
        block_tokens = max(64, min(2048, (1 << 20) // row_bytes))
    T = _round_up(block_tokens, 8)

    want_onehot = (V_pad <= onehot_vocab_limit) if path is None \
        else (path == "onehot")
    if want_onehot:
        # Cap T so the in-kernel (T, V_pad) one-hot intermediate stays ~2 MiB.
        t_cap = max(8, ((2 << 20) // (V_pad * 4)) // 8 * 8)
        T = min(T, t_cap)

    T = max(8, min(T, _round_up(n, 8)))
    n_pad = _round_up(n, T)
    grid = (n_pad // T,)

    table_bytes = V_pad * D_pad * itemsize
    out_blk_bytes = T * row_bytes
    tmp_bytes = (2 * T * V_pad * 4) if want_onehot else (8 * row_bytes)
    # Resident table is single-buffered (memory_space=VMEM); output blocks are
    # double-buffered by the pipeline.
    vmem_need_a = table_bytes + 2 * out_blk_bytes + tmp_bytes + (4 << 20)

    if path == "hbm":
        use_vmem_table = False
    elif path in ("onehot", "vmem_gather"):
        use_vmem_table = True
    else:
        use_vmem_table = vmem_need_a <= vmem_limit
    use_onehot = use_vmem_table and want_onehot

    compiler_params = pltpu.CompilerParams(
        # Disjoint output token blocks -> shard the grid across TensorCores.
        # TODO(synk): verify both v7x TCs are busy in xprof; if not, switch to
        # pltpu.CORE_PARALLEL with an explicit per-core token split.
        dimension_semantics=("parallel",),
        vmem_limit_bytes=vmem_limit,
    )

    tok_flat = tokens.reshape(n).astype(jnp.int32)
    if n_pad != n:
        tok_flat = jnp.pad(tok_flat, (0, n_pad - n))

    if use_onehot:
        kernel = functools.partial(_embed_onehot_kernel,
                                   scale=scale, vocab_size=V)
        cost = pl.CostEstimate(
            flops=2 * n_pad * V_pad * D_pad,
            transcendentals=0,
            bytes_accessed=(n_pad * D_pad + V_pad * D_pad) * itemsize
            + n_pad * 4,
        )
        grid_spec = pltpu.PrefetchScalarGridSpec(
            num_scalar_prefetch=0,
            grid=grid,
            in_specs=[
                pl.BlockSpec((T, 1), lambda i: (i, 0)),
                # Whole table staged into VMEM once, single buffer.
                pl.BlockSpec(memory_space=pltpu.MemorySpace.VMEM),
            ],
            out_specs=pl.BlockSpec((T, D_pad), lambda i: (i, 0)),
        )
        operands = (tok_flat.reshape(n_pad, 1), emb_table)
    elif use_vmem_table:
        kernel = functools.partial(_embed_vmem_gather_kernel, scale=scale,
                                   block_tokens=T, vocab_size=V)
        cost = pl.CostEstimate(
            flops=n_pad * D_pad,
            transcendentals=0,
            bytes_accessed=(n_pad * D_pad + V_pad * D_pad) * itemsize
            + n_pad * 4,
        )
        grid_spec = pltpu.PrefetchScalarGridSpec(
            num_scalar_prefetch=1,
            grid=grid,
            in_specs=[pl.BlockSpec(memory_space=pltpu.MemorySpace.VMEM)],
            out_specs=pl.BlockSpec((T, D_pad), lambda i, tok: (i, 0)),
            scratch_shapes=[pltpu.VMEM((8, D_pad), emb_table.dtype)],
        )
        operands = (tok_flat, emb_table)
    else:
        wave = next(w for w in (32, 16, 8) if T % w == 0)
        kernel = functools.partial(_embed_hbm_kernel, scale=scale,
                                   block_tokens=T, vocab_size=V, wave=wave)
        cost = pl.CostEstimate(
            flops=n_pad * D_pad,
            transcendentals=0,
            bytes_accessed=2 * n_pad * D_pad * itemsize + n_pad * 4,
        )
        grid_spec = pltpu.PrefetchScalarGridSpec(
            num_scalar_prefetch=1,
            grid=grid,
            in_specs=[pl.BlockSpec(memory_space=pl.ANY)],  # table stays in HBM
            out_specs=pl.BlockSpec((T, D_pad), lambda i, tok: (i, 0)),
            scratch_shapes=[pltpu.SemaphoreType.DMA((2,))],
        )
        operands = (tok_flat, emb_table)

    out_flat = pl.pallas_call(
        kernel,
        out_shape=jax.ShapeDtypeStruct((n_pad, D_pad), out_dtype),
        grid_spec=grid_spec,
        compiler_params=compiler_params,
        cost_estimate=cost,
    )(*operands)

    return out_flat[:n, :D].reshape(B, S, D)


if __name__ == "__main__":
    # Small, deterministic problem: vocab=64, emb_dim=128, batch=2, seq=8.
    vocab_size = 64
    emb_dim = 128
    batch = 2
    seq = 8

    key = jax.random.PRNGKey(0)
    k_w, k_tok = jax.random.split(key)

    # nn.Embedding default init: weights ~ N(0, 1).
    emb_table = jax.random.normal(k_w, (vocab_size, emb_dim), dtype=jnp.float32)
    tokens = jax.random.randint(k_tok, (batch, seq), 0, vocab_size,
                                dtype=jnp.int32)

    ref = emb_table[tokens] * math.sqrt(emb_dim)

    # Exercise every code path: one-hot MXU, VMEM scalar gather, HBM DMA
    # gather, and the auto-dispatch.
    for p in ("onehot", "vmem_gather", "hbm", None):
        out = jax.block_until_ready(token_embedder(tokens, emb_table, path=p))
        assert out.shape == (batch, seq, emb_dim), p
        assert out.dtype == jnp.float32, p
        assert jnp.allclose(out, ref, atol=1e-5, rtol=1e-5), p

    print("KERNEL_OK")
</pallas_src>

<mosaic_0001>
module attributes {stable_mosaic.version = 11 : i64} {
  func.func @_embed_onehot_kernel(%arg0: i32, %arg1: memref<16x1xi32, #tpu.memory_space<vmem>>, %arg2: memref<64x128xf32, #tpu.memory_space<vmem>>, %arg3: memref<16x128xf32, #tpu.memory_space<vmem>>) attributes {dimension_semantics = [#tpu.dimension_semantics<parallel>], iteration_bounds = array<i64: 1>, scalar_prefetch = 0 : i64, scratch_operands = 0 : i64, tpu.core_type = #tpu.core_type<tc>, window_params = [{transform_indices = @transform_0, window_bounds = array<i64: 16, 1>}, {pipeline_mode = #tpu.pipeline_mode<synchronous>, transform_indices = @transform_1, window_bounds = array<i64: 64, 128>}, {transform_indices = @transform_2, window_bounds = array<i64: 16, 128>}]} {
    %c0 = arith.constant 0 : index
    %c0_0 = arith.constant 0 : index
    %0 = vector.load %arg1[%c0, %c0_0] : memref<16x1xi32, #tpu.memory_space<vmem>>, vector<16x1xi32>
    %c0_i32 = arith.constant 0 : i32
    %c63_i32 = arith.constant 63 : i32
    %1 = vector.broadcast %c0_i32 : i32 to vector<16x1xi32>
    %2 = arith.maxsi %1, %0 : vector<16x1xi32>
    %3 = vector.broadcast %c63_i32 : i32 to vector<16x1xi32>
    %4 = arith.minsi %3, %2 : vector<16x1xi32>
    %5 = tpu.iota {dimensions = array<i32: 1>} : vector<16x64xi32>
    %6 = vector.broadcast %4 : vector<16x1xi32> to vector<16x64xi32>
    %7 = arith.cmpi eq, %5, %6 : vector<16x64xi32>
    %8 = arith.extui %7 : vector<16x64xi1> to vector<16x64xi32>
    %9 = arith.sitofp %8 : vector<16x64xi32> to vector<16x64xf32>
    %c0_1 = arith.constant 0 : index
    %c0_2 = arith.constant 0 : index
    %10 = vector.load %arg2[%c0_1, %c0_2] : memref<64x128xf32, #tpu.memory_space<vmem>>, vector<64x128xf32>
    %cst = arith.constant dense<0.000000e+00> : vector<16x128xf32>
    %11 = tpu.matmul %9, %10, %cst {dimension_numbers = #tpu.dot_dimension_numbers<[1], [0], [0], [1], [0, 0, 1, 1], [], []>} : vector<16x64xf32>, vector<64x128xf32>, vector<16x128xf32> -> vector<16x128xf32>
    %cst_3 = arith.constant 11.3137083 : f32
    %12 = vector.broadcast %cst_3 : f32 to vector<16x128xf32>
    %13 = arith.mulf %11, %12 : vector<16x128xf32>
    %c0_4 = arith.constant 0 : index
    %c0_5 = arith.constant 0 : index
    %14 = vector.load %arg3[%c0_4, %c0_5] : memref<16x128xf32, #tpu.memory_space<vmem>>, vector<16x128xf32>
    tpu.vector_store %arg3[%c0_4, %c0_5], %13 {strides = array<i32>} : memref<16x128xf32, #tpu.memory_space<vmem>>, vector<16x128xf32>,
    return
  }
  func.func @transform_0(%arg0: i32) -> (i32, i32) {
    %c0_i32 = arith.constant 0 : i32
    %c0_i32_0 = arith.constant 0 : i32
    return %arg0, %c0_i32 : i32, i32
  }
  func.func @transform_1(%arg0: i32) -> (i32, i32) {
    %c0_i32 = arith.constant 0 : i32
    %c0_i32_0 = arith.constant 0 : i32
    %c0_i32_1 = arith.constant 0 : i32
    return %c0_i32, %c0_i32_0 : i32, i32
  }
  func.func @transform_2(%arg0: i32) -> (i32, i32) {
    %c0_i32 = arith.constant 0 : i32
    %c0_i32_0 = arith.constant 0 : i32
    return %arg0, %c0_i32 : i32, i32
  }
}

</mosaic_0001>

<bundles_post_ra>
// kernel: tpu_custom_call.1
= control target key start
LH: loop header
LB: loop body
LE: loop exit
PB: predicated region body
PF: predicated region fallthrough
CT: control target
= control target key end

     0   :  { %7 = vsyncpa [#allocation3], 0  ;;  %s223_s0 = inlined_call_operand.vmem [shape: s32[16,1], index: 0, kind: input, shape index: {}]   ;;  %s224_s1 = inlined_call_operand.hbm [shape: f32[64,128], index: 1, kind: input, shape index: {}]   ;;  %s225_s2 = inlined_call_operand.hbm [shape: f32[16,128], index: 2, kind: output, shape index: {}]  }
   0x1   :  { %8 = vsyncpa [#allocation4], 0  ;;  %s15_s11 = sshll.u32 %s224_s1, 4  ;;  %s184_s12 = smov [#allocation2]   ;;  %s16_s11 = int_to_ptr.hbm [resolvable:$true] %s15_s11 }
   0x2   :  { %s17_s13 = sshll.u32 %s184_s12, 4  ;;  %s185_s14 = smov 128   ;;  %s18_s13 = int_to_ptr.vmem [resolvable:$true] %s17_s13 }
   0x3   :  { %s186_s15 = smov 8  }
   0x4   :  { %23 = dma.hbm_to_vmem [thread:$0]  %s16_s11, 1024, %s18_s13, [#allocation3], %s185_s14, %s185_s14, %s186_s15  }
   0x5   :  { %180 = dma.done.wait [#allocation3], 1024  }
   0x6   :  { %181 = vsyncadd [#allocation3], 4294966272  ;;  %v187_v0 = vmov 0   ;;  %v28_v1 = vld [vmem:[%s223_s0] sm:$0xff]  ;;  %v29_v2 = vld [vmem:[%s223_s0 + $0x8] sm:$0xff]  ;;  %v38_v15 = vlaneseq  ;;  %vm60_vm4 = vcmask 523264  }
   0x7   :  { %131 = vset.pattern.permute.xlu0 %v187_v0  ;;  %v59_v3 = vld [vmem:[#allocation2 + $0x38] sm:$0xff]  ;;  %vm30_vm0 = vcmp.gt.s32.totalorder %v28_v1, 0  ;;  %vm32_vm1 = vcmp.gt.s32.totalorder %v29_v2, 0  ;;  %v58_v4 = vld [vmem:[#allocation2 + $0x30] sm:$0xff]  ;;  %v57_v6 = vld [vmem:[#allocation2 + $0x28] sm:$0xff]  ;;  %v188_v18 = vmov 0.0  }
   0x8   :  { %75 = vmatpush.msra.mxu0 %v59_v3  ;;  %117 = vmatpush.msra.mxu1 %v59_v3  ;;  %v31_v5 = vsel %vm30_vm0, %v28_v1, 0  ;;  %v33_v8 = vsel %vm32_vm1, %v29_v2, 0  ;;  %v56_v9 = vld [vmem:[#allocation2 + $0x20] sm:$0xff]  ;;  %v55_v10 = vld [vmem:[#allocation2 + $0x18] sm:$0xff]  ;;  %v54_v11 = vld [vmem:[#allocation2 + $0x10] sm:$0xff]  ;;  %v39_v16 = vand.u32 127, %v38_v15 }
   0x9   :  { %vm34_vm2 = vcmp.lt.s32.totalorder %v31_v5, 63  ;;  %vm36_vm3 = vcmp.lt.s32.totalorder %v33_v8, 63  ;;  %v53_v13 = vld [vmem:[#allocation2 + $0x8] sm:$0xff]  ;;  %v52_v14 = vld [vmem:[#allocation2] sm:$0xff]  ;;  %s189_s0 = smov [#allocation5]   ;;  %s100_s22 = sshll.u32 %s225_s2, 4  ;;  %s101_s22 = int_to_ptr.hbm [resolvable:$true] %s100_s22 }
   0xa   :  { %76 = vmatpush.msra.mxu0 %v58_v4  ;;  %118 = vmatpush.msra.mxu1 %v58_v4  ;;  %v35_v7 = vsel %vm34_vm2, %v31_v5, 63  ;;  %v37_v12 = vsel %vm36_vm3, %v33_v8, 63  ;;  %s98_s19 = sshll.u32 %s189_s0, 4  ;;  %s99_s19 = int_to_ptr.vmem [resolvable:$true] %s98_s19 }
   0xb   :  { %41 = vperm.xlu0 %131, %v35_v7  }
   0xc   :  { %77 = vmatpush.msra.mxu0 %v57_v6  ;;  %119 = vmatpush.msra.mxu1 %v57_v6 }
   0xe   :  { %78 = vmatpush.msra.mxu0 %v56_v9  ;;  %120 = vmatpush.msra.mxu1 %v56_v9 }
  0x10   :  { %79 = vmatpush.msra.mxu0 %v55_v10  ;;  %121 = vmatpush.msra.mxu1 %v55_v10 }
  0x12   :  { %80 = vmatpush.msra.mxu0 %v54_v11  ;;  %122 = vmatpush.msra.mxu1 %v54_v11 }
  0x13   :  { %44 = vperm.xlu0 %131, %v37_v12  }
  0x14   :  { %81 = vmatpush.msra.mxu0 %v53_v13  ;;  %123 = vmatpush.msra.mxu1 %v53_v13 }
  0x16   :  { %82 = vmatpush.msra.mxu0 %v52_v14  ;;  %124 = vmatpush.msra.mxu1 %v52_v14 }
  0x7d   :  { %v42_v17 = vpop.permute.xlu0 %41 }
  0x7e   :  { %vm46_vm5 = vcmp.eq.s32.totalorder %v39_v16, %v42_v17 }
  0x7f   :  { %v113_v19 = vsel %vm46_vm5, 1.0, %v188_v18 }
  0x80   :  { %115 = vmatmul.msk.f32.vlgmr.msra.gmra.mxu0 %vm60_vm4, %v113_v19 }
  0x85   :  { %v45_v20 = vpop.permute.xlu0 %44 }
  0x86   :  { %vm47_vm6 = vcmp.eq.s32.totalorder %v39_v16, %v45_v20 }
  0x87   :  { %v114_v21 = vsel %vm47_vm6, 1.0, %v188_v18 }
  0x88   :  { %116 = vmatmul.msk.f32.vlgmr.msra.gmra.mxu1 %vm60_vm4, %v114_v21 }
  0xfd   :  { %v84_v22 = vpop.f32.mrf.mxu0 }
  0xfe   :  { %v90_v23 = vmul.f32 11.313708, %v84_v22 }
 0x100   :  { %92 = vst [vmem:[#allocation5] sm:$0xff] %v90_v23 }
 0x105   :  { %v87_v24 = vpop.f32.mrf.mxu1 }
 0x106   :  { %v91_v25 = vmul.f32 11.313708, %v87_v24 }
 0x108   :  { %93 = vst [vmem:[#allocation5 + $0x8] sm:$0xff] %v91_v25 }
 0x109   :  { %106 = dma.vmem_to_hbm [thread:$0]  %s99_s19, 256, %s101_s22, [#allocation4], %s185_s14, %s185_s14, %s186_s15  }
 0x10a   :  { %182 = dma.done.wait [#allocation4], 256  }
 0x10b   :  { %183 = vsyncadd [#allocation4], 4294967040 }
 0x10c   :  { %111 = vsyncpa [#allocation3], 1 }
 0x10d   :  { %112 = vsyncpa [#allocation4], 1 }

</bundles_post_ra>
